<compile_context>
chip_gen: v5e
topology: v5e:2x2
jax: 0.10.0
libtpu: 0.0.40
codegen_flags: <defaults>
</compile_context>

<pallas_src>
import jax
import jax.numpy as jnp
from jax.experimental import pallas as pl
from jax.experimental.pallas import tpu as pltpu


# ----------------------------------------------------------------------------
# helpers
# ----------------------------------------------------------------------------
def _round_up(x, m):
    return ((x + m - 1) // m) * m


def _round_down(x, m):
    return (x // m) * m


def _column_tile(P, QI, w_itemsize, max_weight_tile_bytes=8 << 20):
    """Lane-aligned column tile TQI (multiple of 128) sized so the resident
    fused-weight tile (P, TQI) stays within a modest VMEM budget, plus the
    padded column count QI_pad (a multiple of TQI)."""
    qi_lane = _round_up(QI, 128)
    tqi = qi_lane
    if P * tqi * w_itemsize > max_weight_tile_bytes:
        tqi = max(128, _round_down(max_weight_tile_bytes // (P * w_itemsize), 128))
    qi_pad = _round_up(QI, tqi)
    return tqi, qi_pad


def _row_block(N, P, tqi, x_isz, out_isz, block_vmem_budget=24 << 20):
    """Rows per grid step: sized from a VMEM byte budget (double-buffered x
    block + out block), rounded to sublane packing, capped at ceil(N/2) for
    mid/large N so the 'parallel' axis has >= 2 steps (v7x megacore)."""
    sublane = 16 if x_isz <= 2 else 8
    row_bytes = 2 * (P * x_isz + tqi * out_isz)
    g_cap = max(sublane, _round_down(block_vmem_budget // row_bytes, sublane))
    if N <= 32:
        return N  # single step; block equals the full array (no (8,128) issue)
    g_half = _round_up(-(-N // 2), sublane)  # ceil(N/2), sublane-rounded
    return max(sublane, min(g_cap, g_half))


# ----------------------------------------------------------------------------
# parameter fusion (hoist out of the per-call forward)
# ----------------------------------------------------------------------------
def fuse_patch_map_params(w1, b1, w2, b2, *, compute_dtype=jnp.float32):
    """Fuse the two linears into one (P, QI_pad) weight and a (1, QI_pad) f32
    bias. Call once at parameter-prep time, not per forward."""
    Q, p1 = w1.shape
    I, p2 = w2.shape
    P = p1 * p2
    QI = Q * I
    tqi, qi_pad = _column_tile(P, QI, jnp.dtype(compute_dtype).itemsize)

    wc = jnp.kron(w1.T, w2.T)                                       # (P, QI) f32
    bias = jnp.outer(b1, jnp.sum(w2, axis=1)) + b2[None, :]         # (Q, I)  f32
    bias = bias.reshape(1, QI).astype(jnp.float32)

    if qi_pad != QI:
        wc = jnp.pad(wc, ((0, 0), (0, qi_pad - QI)))
        bias = jnp.pad(bias, ((0, 0), (0, qi_pad - QI)))

    return wc.astype(compute_dtype), bias


# ----------------------------------------------------------------------------
# kernel
# ----------------------------------------------------------------------------
def _mlp_patch_map_kernel(x_ref, wc_ref, bias_ref, o_ref):
    # x_ref:    (G, P)        batched, flattened patches
    # wc_ref:   (P, TQI)      fused weight tile (resident across the row axis)
    # bias_ref: (1, TQI)      fused bias, float32 (resident)
    # o_ref:    (G, TQI)      lane-dense output slab
    acc = jnp.dot(x_ref[...], wc_ref[...], preferred_element_type=jnp.float32)
    o_ref[...] = (acc + bias_ref[...]).astype(o_ref.dtype)


def mlp_patch_map_fused(x, wc, bias, prediction_length, input_size):
    """x: (B, C, p1, p2), fused params from fuse_patch_map_params()
    -> (B, C, prediction_length, input_size)."""
    B, C, p1, p2 = x.shape
    Q, I = prediction_length, input_size
    N = B * C
    P = p1 * p2
    QI = Q * I

    cd = wc.dtype
    x_isz = jnp.dtype(cd).itemsize
    out_dtype = x.dtype
    out_isz = jnp.dtype(out_dtype).itemsize

    tqi, qi_pad = _column_tile(P, QI, x_isz)
    assert wc.shape == (P, qi_pad), (wc.shape, (P, qi_pad))
    assert bias.shape == (1, qi_pad)

    x_flat = x.reshape(N, P).astype(cd)

    G = _row_block(N, P, tqi, x_isz, out_isz)
    n_pad = _round_up(N, G)
    if n_pad != N:
        x_flat = jnp.pad(x_flat, ((0, n_pad - N), (0, 0)))

    grid = (n_pad // G, qi_pad // tqi)

    # Explicit VMEM plan: v5e's default scoped limit is only 16 MiB; keep the
    # cap <= 48 MiB so the plan also fits v7x's 64 MiB physical VMEM.
    plan_bytes = (2 * G * P * x_isz            # double-buffered x block
                  + 2 * G * tqi * out_isz      # double-buffered out block
                  + 2 * P * tqi * x_isz        # resident fused-weight tile
                  + 2 * tqi * 4)               # bias
    vmem_limit = int(min(max(plan_bytes + (4 << 20), 32 << 20), 48 << 20))

    out_flat = pl.pallas_call(
        _mlp_patch_map_kernel,
        out_shape=jax.ShapeDtypeStruct((n_pad, qi_pad), out_dtype),
        grid_spec=pl.GridSpec(
            grid=grid,
            in_specs=[
                pl.BlockSpec((G, P), lambda n, j: (n, 0)),    # batched patches
                pl.BlockSpec((P, tqi), lambda n, j: (0, j)),  # fused weight tile
                pl.BlockSpec((1, tqi), lambda n, j: (0, j)),  # fused bias (f32)
            ],
            out_specs=pl.BlockSpec((G, tqi), lambda n, j: (n, j)),
        ),
        compiler_params=pltpu.CompilerParams(
            dimension_semantics=("parallel", "parallel"),
            vmem_limit_bytes=vmem_limit,
        ),
    )(x_flat, wc, bias)

    return out_flat[:N, :QI].reshape(B, C, Q, I)


def mlp_patch_map(x, w1, b1, w2, b2, *, compute_dtype=jnp.float32):
    """Convenience wrapper. Prefer fusing params once and calling
    mlp_patch_map_fused() per forward."""
    wc, bias = fuse_patch_map_params(w1, b1, w2, b2, compute_dtype=compute_dtype)
    return mlp_patch_map_fused(x, wc, bias, w1.shape[0], w2.shape[0])


# ----------------------------------------------------------------------------
# pure-JAX reference (mirrors the PyTorch forward)
# ----------------------------------------------------------------------------
def mlp_patch_map_ref(x, w1, b1, w2, b2):
    y = jnp.swapaxes(x, -1, -2)                       # b c w h -> b c h w
    y = jnp.einsum("bchw,qw->bchq", y, w1) + b1       # Linear(p1 -> Q)
    y = jnp.swapaxes(y, -1, -2)                       # b c h w -> b c w h
    y = jnp.einsum("bcqh,ih->bcqi", y, w2) + b2       # Linear(p2 -> I)
    return y


if __name__ == "__main__":
    # Module hyperparameters (small, consistent with MLPPatchMap.__init__)
    patch_size = (2, 2)
    context_length = 16
    prediction_length = 8
    input_size = 16

    p1 = context_length // patch_size[0]   # 8
    p2 = input_size // patch_size[1]       # 8
    B, C = 2, 4

    key = jax.random.PRNGKey(0)
    kx, kw1, kb1, kw2, kb2 = jax.random.split(key, 5)

    x = jax.random.normal(kx, (B, C, p1, p2), dtype=jnp.float32)
    w1 = jax.random.uniform(kw1, (prediction_length, p1), jnp.float32,
                            -1.0 / p1 ** 0.5, 1.0 / p1 ** 0.5)
    b1 = jax.random.uniform(kb1, (prediction_length,), jnp.float32,
                            -1.0 / p1 ** 0.5, 1.0 / p1 ** 0.5)
    w2 = jax.random.uniform(kw2, (input_size, p2), jnp.float32,
                            -1.0 / p2 ** 0.5, 1.0 / p2 ** 0.5)
    b2 = jax.random.uniform(kb2, (input_size,), jnp.float32,
                            -1.0 / p2 ** 0.5, 1.0 / p2 ** 0.5)

    # Fuse parameters once (hoisted out of the forward pass).
    wc, bias = fuse_patch_map_params(w1, b1, w2, b2, compute_dtype=jnp.float32)

    out = mlp_patch_map_fused(x, wc, bias, prediction_length, input_size)
    out = jax.block_until_ready(out)

    ref = mlp_patch_map_ref(x, w1, b1, w2, b2)
    assert out.shape == (B, C, prediction_length, input_size), out.shape
    assert jnp.allclose(out, ref, atol=2e-5, rtol=2e-5), "mismatch vs reference"

    print("KERNEL_OK")
</pallas_src>

<mosaic_0001>
module attributes {stable_mosaic.version = 11 : i64} {
  func.func @_mlp_patch_map_kernel(%arg0: i32, %arg1: i32, %arg2: memref<8x64xf32, #tpu.memory_space<vmem>>, %arg3: memref<64x128xf32, #tpu.memory_space<vmem>>, %arg4: memref<1x128xf32, #tpu.memory_space<vmem>>, %arg5: memref<8x128xf32, #tpu.memory_space<vmem>>) attributes {dimension_semantics = [#tpu.dimension_semantics<parallel>, #tpu.dimension_semantics<parallel>], iteration_bounds = array<i64: 1, 1>, scalar_prefetch = 0 : i64, scratch_operands = 0 : i64, tpu.core_type = #tpu.core_type<tc>, window_params = [{transform_indices = @transform_0, window_bounds = array<i64: 8, 64>}, {transform_indices = @transform_1, window_bounds = array<i64: 64, 128>}, {transform_indices = @transform_2, window_bounds = array<i64: 1, 128>}, {transform_indices = @transform_3, window_bounds = array<i64: 8, 128>}]} {
    %c0 = arith.constant 0 : index
    %c0_0 = arith.constant 0 : index
    %0 = vector.load %arg2[%c0, %c0_0] : memref<8x64xf32, #tpu.memory_space<vmem>>, vector<8x64xf32>
    %c0_1 = arith.constant 0 : index
    %c0_2 = arith.constant 0 : index
    %1 = vector.load %arg3[%c0_1, %c0_2] : memref<64x128xf32, #tpu.memory_space<vmem>>, vector<64x128xf32>
    %cst = arith.constant dense<0.000000e+00> : vector<8x128xf32>
    %2 = tpu.matmul %0, %1, %cst {dimension_numbers = #tpu.dot_dimension_numbers<[1], [0], [0], [1], [0, 0, 1, 1], [], []>} : vector<8x64xf32>, vector<64x128xf32>, vector<8x128xf32> -> vector<8x128xf32>
    %c0_3 = arith.constant 0 : index
    %c0_4 = arith.constant 0 : index
    %3 = vector.load %arg4[%c0_3, %c0_4] : memref<1x128xf32, #tpu.memory_space<vmem>>, vector<1x128xf32>
    %4 = vector.broadcast %3 : vector<1x128xf32> to vector<8x128xf32>
    %5 = arith.addf %2, %4 : vector<8x128xf32>
    %c0_5 = arith.constant 0 : index
    %c0_6 = arith.constant 0 : index
    %6 = vector.load %arg5[%c0_5, %c0_6] : memref<8x128xf32, #tpu.memory_space<vmem>>, vector<8x128xf32>
    tpu.vector_store %arg5[%c0_5, %c0_6], %5 {strides = array<i32>} : memref<8x128xf32, #tpu.memory_space<vmem>>, vector<8x128xf32>,
    return
  }
  func.func @transform_0(%arg0: i32, %arg1: i32) -> (i32, i32) {
    %c0_i32 = arith.constant 0 : i32
    %c0_i32_0 = arith.constant 0 : i32
    return %arg0, %c0_i32 : i32, i32
  }
  func.func @transform_1(%arg0: i32, %arg1: i32) -> (i32, i32) {
    %c0_i32 = arith.constant 0 : i32
    %c0_i32_0 = arith.constant 0 : i32
    return %c0_i32, %arg1 : i32, i32
  }
  func.func @transform_2(%arg0: i32, %arg1: i32) -> (i32, i32) {
    %c0_i32 = arith.constant 0 : i32
    %c0_i32_0 = arith.constant 0 : i32
    return %c0_i32, %arg1 : i32, i32
  }
  func.func @transform_3(%arg0: i32, %arg1: i32) -> (i32, i32) {
    %c0_i32 = arith.constant 0 : i32
    return %arg0, %arg1 : i32, i32
  }
}

</mosaic_0001>

<bundles_post_ra>
// kernel: tpu_custom_call.1
= control target key start
LH: loop header
LB: loop body
LE: loop exit
PB: predicated region body
PF: predicated region fallthrough
CT: control target
= control target key end

     0   :  { %8 = vsyncpa [#allocation3], 0  ;;  %s223_s0 = inlined_call_operand.hbm [shape: f32[8,64], index: 0, kind: input, shape index: {}]   ;;  %s224_s1 = inlined_call_operand.hbm [shape: f32[64,128], index: 1, kind: input, shape index: {}]   ;;  %s225_s2 = inlined_call_operand.vmem [shape: f32[1,128], index: 2, kind: input, shape index: {}]   ;;  %s226_s3 = inlined_call_operand.hbm [shape: f32[8,128], index: 3, kind: output, shape index: {}]  }
   0x1   :  { %9 = vsyncpa [#allocation6], 0 }
   0x2   :  { %10 = vsyncpa [#allocation4], 0  ;;  %s16_s14 = sshll.u32 %s223_s0, 4  ;;  %s186_s15 = smov [#allocation2]   ;;  %s17_s14 = int_to_ptr.hbm [resolvable:$true] %s16_s14 }
   0x3   :  { %s18_s16 = sshll.u32 %s186_s15, 4  ;;  %s26_s19 = sshll.u32 %s224_s1, 4  ;;  %s19_s16 = int_to_ptr.vmem [resolvable:$true] %s18_s16  ;;  %s27_s19 = int_to_ptr.hbm [resolvable:$true] %s26_s19 }
   0x4   :  { %21 = dma.hbm_to_vmem [thread:$0]  %s17_s14, 128, %s19_s16, [#allocation3]  }
   0x5   :  { %s187_s20 = smov [#allocation5]   ;;  %s188_s22 = smov 128  }
   0x6   :  { %s28_s21 = sshll.u32 %s187_s20, 4  ;;  %s189_s23 = smov 8   ;;  %s29_s21 = int_to_ptr.vmem [resolvable:$true] %s28_s21 }
   0x7   :  { %34 = dma.hbm_to_vmem [thread:$0]  %s27_s19, 1024, %s29_s21, [#allocation6], %s188_s22, %s188_s22, %s189_s23  }
   0x8   :  { %180 = dma.done.wait [#allocation3], 128  }
   0x9   :  { %181 = vsyncadd [#allocation3], 4294967168 }
   0xa   :  { %182 = dma.done.wait [#allocation6], 1024  }
   0xb   :  { %183 = vsyncadd [#allocation6], 4294966272  ;;  %v53_v0 = vld [vmem:[#allocation5 + $0x38] sm:$0xff]  ;;  %v52_v1 = vld [vmem:[#allocation5 + $0x30] sm:$0xff]  ;;  %vm58_vm0 = vcmask 523264   ;;  %s190_s24 = smov [#allocation7]  }
   0xc   :  { %70 = vmatpush.msra.mxu0 %v53_v0  ;;  %v51_v2 = vld [vmem:[#allocation5 + $0x28] sm:$0xff]  ;;  %v50_v3 = vld [vmem:[#allocation5 + $0x20] sm:$0xff]  ;;  %v49_v4 = vld [vmem:[#allocation5 + $0x18] sm:$0xff]  ;;  %s88_s25 = sshll.u32 %s190_s24, 4  ;;  %s90_s28 = sshll.u32 %s226_s3, 4  ;;  %s89_s25 = int_to_ptr.vmem [resolvable:$true] %s88_s25  ;;  %s91_s28 = int_to_ptr.hbm [resolvable:$true] %s90_s28 }
   0xd   :  { %v48_v5 = vld [vmem:[#allocation5 + $0x10] sm:$0xff]  ;;  %v47_v6 = vld [vmem:[#allocation5 + $0x8] sm:$0xff]  ;;  %v46_v7 = vld [vmem:[#allocation5] sm:$0xff] }
   0xe   :  { %71 = vmatpush.msra.mxu0 %v52_v1  ;;  %v45_v8 = vld [vmem:[#allocation2] sm:$0xff] }
   0xf   :  { %v107_v9 = vld [vmem:[%s225_s2] ss:$0 sm:$0xff] }
  0x10   :  { %72 = vmatpush.msra.mxu0 %v51_v2 }
  0x12   :  { %73 = vmatpush.msra.mxu0 %v50_v3 }
  0x14   :  { %74 = vmatpush.msra.mxu0 %v49_v4 }
  0x16   :  { %75 = vmatpush.msra.mxu0 %v48_v5 }
  0x18   :  { %76 = vmatpush.msra.mxu0 %v47_v6 }
  0x1a   :  { %77 = vmatpush.msra.mxu0 %v46_v7 }
  0x1b   :  { %101 = vmatmul.msk.f32.vlgmr.msra.gmra.mxu0 %vm58_vm0, %v45_v8 }
  0x98   :  { %v79_v10 = vpop.f32.mrf.mxu0 }
  0x99   :  { %v80_v11 = vadd.f32 %v107_v9, %v79_v10 }
  0x9b   :  { %82 = vst [vmem:[#allocation7] sm:$0xff] %v80_v11 }
  0x9c   :  { %93 = dma.vmem_to_hbm [thread:$0]  %s89_s25, 128, %s91_s28, [#allocation4]  }
  0x9d   :  { %184 = dma.done.wait [#allocation4], 128  }
  0x9e   :  { %185 = vsyncadd [#allocation4], 4294967168 }
  0x9f   :  { %98 = vsyncpa [#allocation3], 1 }
  0xa0   :  { %99 = vsyncpa [#allocation6], 1 }
  0xa1   :  { %100 = vsyncpa [#allocation4], 1 }

</bundles_post_ra>
